<compile_context>
chip_gen: v7x
topology: tpu7x:2x2x1
jax: 0.10.0
libtpu: 0.0.40
codegen_flags: <defaults>
</compile_context>

<pallas_src>
import jax
import jax.numpy as jnp
from jax.experimental import pallas as pl
from jax.experimental.pallas import tpu as pltpu

D_IN, H1, H2, D_OUT = 784, 256, 128, 10
D_OUT_PAD = 128   # lane-dense output (zero-padded), sliced back to 10 in the wrapper


def _round_up(n, m):
    return (n + m - 1) // m * m


def _device_kind():
    try:
        return jax.devices()[0].device_kind.lower()
    except Exception:
        return ""


def _tensorcores_per_device():
    """TensorCores sharing the 'parallel' grid axis on one device (best-effort)."""
    kind = _device_kind()
    if "v7" in kind:          # v7x: 2 TCs per chip
        return 2
    try:
        nc = getattr(jax.devices()[0], "num_cores", None)
        if nc:
            return int(nc)    # megacore chips report 2
    except Exception:
        pass
    return 1                  # v5e / v6e: single TensorCore


def _is_v5e():
    kind = _device_kind()
    return ("v5 lite" in kind) or ("v5e" in kind) or ("v5lite" in kind)


def _pick_batch_tile(B, tb_max, n_cores):
    """Pick (tb, B_pad). Single-TC: fewest steps. Multi-TC: step count % n_cores == 0."""
    tb_max = max(16, _round_up(tb_max, 16))
    B16 = _round_up(max(B, 1), 16)
    if n_cores <= 1:
        tb = min(B16, tb_max)
        B_pad = _round_up(B16, tb)
    else:
        steps = _round_up(pl.cdiv(B16, tb_max), n_cores)
        tb = _round_up(pl.cdiv(B16, steps), 16)
        B_pad = tb * steps
    return tb, B_pad


def _make_kernel(act_dtype):
    """act_dtype: dtype for the bias-add/ReLU epilogue (bf16 on v6e/v7x, f32 on v5e)."""

    def mlp_kernel(x_ref, w1_ref, b1_ref, w2_ref, b2_ref, w3_ref, b3_ref, o_ref):
        # fc1: in-kernel cast of the f32 x tile to bf16, f32 MXU accumulation.
        x = x_ref[...].astype(jnp.bfloat16)
        h1 = jnp.dot(x, w1_ref[...], preferred_element_type=jnp.float32)
        h1 = jnp.maximum(h1.astype(act_dtype) + b1_ref[...], 0).astype(jnp.bfloat16)
        # fc2
        h2 = jnp.dot(h1, w2_ref[...], preferred_element_type=jnp.float32)
        h2 = jnp.maximum(h2.astype(act_dtype) + b2_ref[...], 0).astype(jnp.bfloat16)
        # fc3 (output lanes zero-padded to 128 -> unmasked stores)
        out = jnp.dot(h2, w3_ref[...], preferred_element_type=jnp.float32)
        o_ref[...] = (out + b3_ref[...]).astype(o_ref.dtype)

    return mlp_kernel


def fully_connected_network(x, params, *, tb_max=512, out_dtype=jnp.bfloat16,
                            return_padded=False):
    """x: [B, 784] float32. params: dict of w1,b1,w2,b2,w3,b3 (w stored [in, out]).

    Returns [B, 10] (out_dtype) or, if return_padded=True, the raw padded
    [B_pad, 128] kernel output (caller must ignore rows >= B and lanes >= 10).
    """
    B = x.shape[0]
    n_cores = _tensorcores_per_device()
    tb, B_pad = _pick_batch_tile(B, tb_max, n_cores)
    grid = (B_pad // tb,)

    # bf16 bias/ReLU epilogue on bf16-VPU chips; f32 on v5e.
    act_dtype = jnp.float32 if _is_v5e() else jnp.bfloat16

    # Operand prep: bf16 weights (f32 accumulation in-kernel), lane-dense padded fc3.
    w1 = params["w1"].astype(jnp.bfloat16)                                   # [784, 256]
    b1 = params["b1"].astype(act_dtype)                                      # [1, 256]
    w2 = params["w2"].astype(jnp.bfloat16)                                   # [256, 128]
    b2 = params["b2"].astype(act_dtype)                                      # [1, 128]
    w3 = jnp.pad(params["w3"], ((0, 0), (0, D_OUT_PAD - D_OUT))).astype(jnp.bfloat16)
    b3 = jnp.pad(params["b3"], ((0, 0), (0, D_OUT_PAD - D_OUT))).astype(jnp.float32)

    # x stays f32 and un-padded on the feature axis; pad batch only when needed.
    xp = x if B_pad == B else jnp.pad(x, ((0, B_pad - B), (0, 0)))

    out = pl.pallas_call(
        _make_kernel(act_dtype),
        out_shape=jax.ShapeDtypeStruct((B_pad, D_OUT_PAD), out_dtype),
        grid_spec=pltpu.PrefetchScalarGridSpec(
            num_scalar_prefetch=0,
            grid=grid,
            in_specs=[
                pl.BlockSpec((tb, D_IN), lambda i: (i, 0)),        # x tile (f32, full 784)
                pl.BlockSpec((D_IN, H1), lambda i: (0, 0)),        # w1 (resident)
                pl.BlockSpec((1, H1), lambda i: (0, 0)),           # b1
                pl.BlockSpec((H1, H2), lambda i: (0, 0)),          # w2
                pl.BlockSpec((1, H2), lambda i: (0, 0)),           # b2
                pl.BlockSpec((H2, D_OUT_PAD), lambda i: (0, 0)),   # w3 (lane-dense)
                pl.BlockSpec((1, D_OUT_PAD), lambda i: (0, 0)),    # b3
            ],
            out_specs=pl.BlockSpec((tb, D_OUT_PAD), lambda i: (i, 0)),
        ),
        compiler_params=pltpu.CompilerParams(
            dimension_semantics=("parallel",),
            vmem_limit_bytes=32 * 1024 * 1024,
        ),
    )(xp, w1, b1, w2, b2, w3, b3)

    if return_padded:
        return out
    return out[:B, :D_OUT]


def init_params(key):
    """Deterministic init mirroring nn.Linear shapes (weights stored transposed as [in, out])."""
    ks = jax.random.split(key, 6)

    def linear(kw, kb, fan_in, fan_out):
        # PyTorch default init: U(-1/sqrt(fan_in), 1/sqrt(fan_in))
        bound = 1.0 / jnp.sqrt(fan_in)
        w = jax.random.uniform(kw, (fan_in, fan_out), jnp.float32, -bound, bound)
        b = jax.random.uniform(kb, (1, fan_out), jnp.float32, -bound, bound)
        return w, b

    w1, b1 = linear(ks[0], ks[1], D_IN, H1)
    w2, b2 = linear(ks[2], ks[3], H1, H2)
    w3, b3 = linear(ks[4], ks[5], H2, D_OUT)
    return {"w1": w1, "b1": b1, "w2": w2, "b2": b2, "w3": w3, "b3": b3}


def reference(x, p):
    """Pure-JAX reference mirroring the kernel numerics (bf16 operands, f32 accumulation)."""
    bf = jnp.bfloat16
    h1 = jnp.maximum(
        jnp.dot(x.astype(bf), p["w1"].astype(bf), preferred_element_type=jnp.float32) + p["b1"],
        0.0).astype(bf)
    h2 = jnp.maximum(
        jnp.dot(h1, p["w2"].astype(bf), preferred_element_type=jnp.float32) + p["b2"],
        0.0).astype(bf)
    return jnp.dot(h2, p["w3"].astype(bf), preferred_element_type=jnp.float32) + p["b3"]


if __name__ == "__main__":
    key = jax.random.PRNGKey(0)
    k_x, k_p = jax.random.split(key)
    B = 64  # small test batch; single-TC -> 1 grid step, 2-TC -> 2 balanced steps
    x = jax.random.normal(k_x, (B, D_IN), jnp.float32)
    params = init_params(k_p)

    out = fully_connected_network(x, params)
    out = jax.block_until_ready(out)

    ref = reference(x, params)
    assert out.shape == (B, D_OUT)
    assert jnp.allclose(out.astype(jnp.float32), ref, atol=3e-2, rtol=3e-2), "mismatch vs reference"
    print("KERNEL_OK")
</pallas_src>

<mosaic_0001>
module attributes {stable_mosaic.version = 11 : i64} {
  func.func @mlp_kernel(%arg0: i32, %arg1: memref<64x784xf32, #tpu.memory_space<vmem>>, %arg2: memref<784x256xbf16, #tpu.memory_space<vmem>>, %arg3: memref<1x256xbf16, #tpu.memory_space<vmem>>, %arg4: memref<256x128xbf16, #tpu.memory_space<vmem>>, %arg5: memref<1x128xbf16, #tpu.memory_space<vmem>>, %arg6: memref<128x128xbf16, #tpu.memory_space<vmem>>, %arg7: memref<1x128xf32, #tpu.memory_space<vmem>>, %arg8: memref<64x128xbf16, #tpu.memory_space<vmem>>) attributes {dimension_semantics = [#tpu.dimension_semantics<parallel>], iteration_bounds = array<i64: 1>, scalar_prefetch = 0 : i64, scratch_operands = 0 : i64, tpu.core_type = #tpu.core_type<tc>, window_params = [{transform_indices = @transform_0, window_bounds = array<i64: 64, 784>}, {pipeline_mode = #tpu.pipeline_mode<synchronous>, transform_indices = @transform_1, window_bounds = array<i64: 784, 256>}, {pipeline_mode = #tpu.pipeline_mode<synchronous>, transform_indices = @transform_2, window_bounds = array<i64: 1, 256>}, {pipeline_mode = #tpu.pipeline_mode<synchronous>, transform_indices = @transform_3, window_bounds = array<i64: 256, 128>}, {pipeline_mode = #tpu.pipeline_mode<synchronous>, transform_indices = @transform_4, window_bounds = array<i64: 1, 128>}, {pipeline_mode = #tpu.pipeline_mode<synchronous>, transform_indices = @transform_5, window_bounds = array<i64: 128, 128>}, {pipeline_mode = #tpu.pipeline_mode<synchronous>, transform_indices = @transform_6, window_bounds = array<i64: 1, 128>}, {transform_indices = @transform_7, window_bounds = array<i64: 64, 128>}]} {
    %c0 = arith.constant 0 : index
    %c0_0 = arith.constant 0 : index
    %0 = vector.load %arg1[%c0, %c0_0] : memref<64x784xf32, #tpu.memory_space<vmem>>, vector<64x784xf32>
    %1 = arith.truncf %0 : vector<64x784xf32> to vector<64x784xbf16>
    %c0_1 = arith.constant 0 : index
    %c0_2 = arith.constant 0 : index
    %2 = vector.load %arg2[%c0_1, %c0_2] : memref<784x256xbf16, #tpu.memory_space<vmem>>, vector<784x256xbf16>
    %cst = arith.constant dense<0.000000e+00> : vector<64x256xf32>
    %3 = tpu.matmul %1, %2, %cst {dimension_numbers = #tpu.dot_dimension_numbers<[1], [0], [0], [1], [0, 0, 1, 1], [], []>} : vector<64x784xbf16>, vector<784x256xbf16>, vector<64x256xf32> -> vector<64x256xf32>
    %4 = arith.truncf %3 : vector<64x256xf32> to vector<64x256xbf16>
    %c0_3 = arith.constant 0 : index
    %c0_4 = arith.constant 0 : index
    %5 = vector.load %arg3[%c0_3, %c0_4] : memref<1x256xbf16, #tpu.memory_space<vmem>>, vector<1x256xbf16>
    %6 = vector.broadcast %5 : vector<1x256xbf16> to vector<64x256xbf16>
    %7 = arith.addf %4, %6 : vector<64x256xbf16>
    %cst_5 = arith.constant 0.000000e+00 : bf16
    %8 = vector.broadcast %cst_5 : bf16 to vector<64x256xbf16>
    %9 = arith.maximumf %7, %8 : vector<64x256xbf16>
    %c0_6 = arith.constant 0 : index
    %c0_7 = arith.constant 0 : index
    %10 = vector.load %arg4[%c0_6, %c0_7] : memref<256x128xbf16, #tpu.memory_space<vmem>>, vector<256x128xbf16>
    %cst_8 = arith.constant dense<0.000000e+00> : vector<64x128xf32>
    %11 = tpu.matmul %9, %10, %cst_8 {dimension_numbers = #tpu.dot_dimension_numbers<[1], [0], [0], [1], [0, 0, 1, 1], [], []>} : vector<64x256xbf16>, vector<256x128xbf16>, vector<64x128xf32> -> vector<64x128xf32>
    %12 = arith.truncf %11 : vector<64x128xf32> to vector<64x128xbf16>
    %c0_9 = arith.constant 0 : index
    %c0_10 = arith.constant 0 : index
    %13 = vector.load %arg5[%c0_9, %c0_10] : memref<1x128xbf16, #tpu.memory_space<vmem>>, vector<1x128xbf16>
    %14 = vector.broadcast %13 : vector<1x128xbf16> to vector<64x128xbf16>
    %15 = arith.addf %12, %14 : vector<64x128xbf16>
    %cst_11 = arith.constant 0.000000e+00 : bf16
    %16 = vector.broadcast %cst_11 : bf16 to vector<64x128xbf16>
    %17 = arith.maximumf %15, %16 : vector<64x128xbf16>
    %c0_12 = arith.constant 0 : index
    %c0_13 = arith.constant 0 : index
    %18 = vector.load %arg6[%c0_12, %c0_13] : memref<128x128xbf16, #tpu.memory_space<vmem>>, vector<128x128xbf16>
    %cst_14 = arith.constant dense<0.000000e+00> : vector<64x128xf32>
    %19 = tpu.matmul %17, %18, %cst_14 {dimension_numbers = #tpu.dot_dimension_numbers<[1], [0], [0], [1], [0, 0, 1, 1], [], []>} : vector<64x128xbf16>, vector<128x128xbf16>, vector<64x128xf32> -> vector<64x128xf32>
    %c0_15 = arith.constant 0 : index
    %c0_16 = arith.constant 0 : index
    %20 = vector.load %arg7[%c0_15, %c0_16] : memref<1x128xf32, #tpu.memory_space<vmem>>, vector<1x128xf32>
    %21 = vector.broadcast %20 : vector<1x128xf32> to vector<64x128xf32>
    %22 = arith.addf %19, %21 : vector<64x128xf32>
    %23 = arith.truncf %22 : vector<64x128xf32> to vector<64x128xbf16>
    %c0_17 = arith.constant 0 : index
    %c0_18 = arith.constant 0 : index
    %24 = vector.load %arg8[%c0_17, %c0_18] : memref<64x128xbf16, #tpu.memory_space<vmem>>, vector<64x128xbf16>
    tpu.vector_store %arg8[%c0_17, %c0_18], %23 {strides = array<i32>} : memref<64x128xbf16, #tpu.memory_space<vmem>>, vector<64x128xbf16>,
    return
  }
  func.func @transform_0(%arg0: i32) -> (i32, i32) {
    %c0_i32 = arith.constant 0 : i32
    %c0_i32_0 = arith.constant 0 : i32
    return %arg0, %c0_i32 : i32, i32
  }
  func.func @transform_1(%arg0: i32) -> (i32, i32) {
    %c0_i32 = arith.constant 0 : i32
    %c0_i32_0 = arith.constant 0 : i32
    %c0_i32_1 = arith.constant 0 : i32
    return %c0_i32, %c0_i32_0 : i32, i32
  }
  func.func @transform_2(%arg0: i32) -> (i32, i32) {
    %c0_i32 = arith.constant 0 : i32
    %c0_i32_0 = arith.constant 0 : i32
    %c0_i32_1 = arith.constant 0 : i32
    return %c0_i32, %c0_i32_0 : i32, i32
  }
  func.func @transform_3(%arg0: i32) -> (i32, i32) {
    %c0_i32 = arith.constant 0 : i32
    %c0_i32_0 = arith.constant 0 : i32
    %c0_i32_1 = arith.constant 0 : i32
    return %c0_i32, %c0_i32_0 : i32, i32
  }
  func.func @transform_4(%arg0: i32) -> (i32, i32) {
    %c0_i32 = arith.constant 0 : i32
    %c0_i32_0 = arith.constant 0 : i32
    %c0_i32_1 = arith.constant 0 : i32
    return %c0_i32, %c0_i32_0 : i32, i32
  }
  func.func @transform_5(%arg0: i32) -> (i32, i32) {
    %c0_i32 = arith.constant 0 : i32
    %c0_i32_0 = arith.constant 0 : i32
    %c0_i32_1 = arith.constant 0 : i32
    return %c0_i32, %c0_i32_0 : i32, i32
  }
  func.func @transform_6(%arg0: i32) -> (i32, i32) {
    %c0_i32 = arith.constant 0 : i32
    %c0_i32_0 = arith.constant 0 : i32
    %c0_i32_1 = arith.constant 0 : i32
    return %c0_i32, %c0_i32_0 : i32, i32
  }
  func.func @transform_7(%arg0: i32) -> (i32, i32) {
    %c0_i32 = arith.constant 0 : i32
    %c0_i32_0 = arith.constant 0 : i32
    return %arg0, %c0_i32 : i32, i32
  }
}

</mosaic_0001>

<bundles_post_ra>
// kernel: tpu_custom_call.1
= control target key start
LH: loop header
LB: loop body
LE: loop exit
PB: predicated region body
PF: predicated region fallthrough
CT: control target
= control target key end

     0   :  { %12 = vsyncpa [#allocation3], 0  ;;  %s2370_s0 = inlined_call_operand.hbm [shape: f32[64,784], index: 0, kind: input, shape index: {}]   ;;  %s2371_s1 = inlined_call_operand.hbm [shape: bf16[784,256], index: 1, kind: input, shape index: {}]   ;;  %s2372_s2 = inlined_call_operand.vmem [shape: bf16[1,256], index: 2, kind: input, shape index: {}]   ;;  %s2373_s3 = inlined_call_operand.hbm [shape: bf16[256,128], index: 3, kind: input, shape index: {}]   ;;  %s2374_s4 = inlined_call_operand.vmem [shape: bf16[1,128], index: 4, kind: input, shape index: {}]   ;;  %s2375_s5 = inlined_call_operand.hbm [shape: bf16[128,128], index: 5, kind: input, shape index: {}]   ;;  %s2376_s6 = inlined_call_operand.vmem [shape: f32[1,128], index: 6, kind: input, shape index: {}]   ;;  %s2377_s7 = inlined_call_operand.hbm [shape: bf16[64,128], index: 7, kind: output, shape index: {}]  }
   0x1   :  { %13 = vsyncpa [#allocation6], 0 }
   0x2   :  { %14 = vsyncpa [#allocation9], 0 }
   0x3   :  { %15 = vsyncpa [#allocation4], 0  ;;  %s2139_s24 = smov [#allocation5]   ;;  %s2021_s28 = scalar_lea.hbm %s2371_s1, 12544 }
   0x4   :  { %s33_s25 = sshll.u32 %s2139_s24, 4  ;;  %p2022_p0 = scmp.ne.s32.totalorder %s2371_s1, %s2021_s28  ;;  %s34_s25 = int_to_ptr.vmem [resolvable:$true] %s33_s25 }
   0x5   :  { %p2025_p1 = scmp.lt.u32.totalorder %s2021_s28, %s2371_s1 }
   0x7   :  { %p2027_p2 = pnand %p2025_p1, %p2022_p0 }
   0x9   :  { %2030 = shalt.err (!%p2027_p2)
}
   0xa   :  { %s2031_s10 = scalar_lea.vmem %s34_s25, 12544  ;;  %p2036_p4 = scmp.lt.s32.totalorder %s34_s25, %s34_s25 }
   0xb   :  { %p2032_p3 = scmp.ne.s32.totalorder %s34_s25, %s2031_s10  ;;  %p2037_p5 = scmp.lt.s32.totalorder %s2031_s10, %s2031_s10 }
   0xd   :  { %p2038_p6 = por %p2037_p5, %p2036_p4 }
   0xf   :  { %p2039_p7 = pnand %p2038_p6, %p2032_p3 }
  0x11   :  { %2042 = shalt.err (!%p2039_p7)
}
  0x12   :  { %s2140_s11 = smov 128   ;;  %s2141_s12 = smov 8  }
  0x13   :  { %39 = dma.hbm_to_vmem [thread:$0]  %s2371_s1, 12544, %s34_s25, [#allocation6], %s2140_s11, %s2140_s11, %s2141_s12  }
  0x14   :  { %s2142_s15 = smov [#allocation2]   ;;  %s2043_s19 = scalar_lea.hbm %s2370_s0, 7168 }
  0x15   :  { %s21_s16 = sshll.u32 %s2142_s15, 4  ;;  %p2044_p8 = scmp.ne.s32.totalorder %s2370_s0, %s2043_s19  ;;  %s22_s16 = int_to_ptr.vmem [resolvable:$true] %s21_s16 }
  0x16   :  { %p2047_p9 = scmp.lt.u32.totalorder %s2043_s19, %s2370_s0 }
  0x18   :  { %p2049_p10 = pnand %p2047_p9, %p2044_p8 }
  0x1a   :  { %2052 = shalt.err (!%p2049_p10)
}
  0x1b   :  { %s2053_s24 = scalar_lea.vmem %s22_s16, 7168  ;;  %p2058_p12 = scmp.lt.s32.totalorder %s22_s16, %s22_s16 }
  0x1c   :  { %p2054_p11 = scmp.ne.s32.totalorder %s22_s16, %s2053_s24  ;;  %p2059_p13 = scmp.lt.s32.totalorder %s2053_s24, %s2053_s24 }
  0x1e   :  { %p2060_p0 = por %p2059_p13, %p2058_p12 }
  0x20   :  { %p2061_p1 = pnand %p2060_p0, %p2054_p11 }
  0x22   :  { %2064 = shalt.err (!%p2061_p1)
}
  0x23   :  { %s2143_s1 = smov 896   ;;  %s2144_s25 = smov 56  }
  0x24   :  { %27 = dma.hbm_to_vmem [thread:$0]  %s2370_s0, 7168, %s22_s16, [#allocation3], %s2143_s1, %s2143_s1, %s2144_s25  }
  0x25   :  { %s2145_s28 = smov [#allocation7]   ;;  %s2065_s9 = scalar_lea.hbm %s2373_s3, 2048 }
  0x26   :  { %s47_s29 = sshll.u32 %s2145_s28, 4  ;;  %p2066_p2 = scmp.ne.s32.totalorder %s2373_s3, %s2065_s9  ;;  %s48_s29 = int_to_ptr.vmem [resolvable:$true] %s47_s29 }
  0x27   :  { %p2069_p3 = scmp.lt.u32.totalorder %s2065_s9, %s2373_s3 }
  0x29   :  { %p2071_p4 = pnand %p2069_p3, %p2066_p2 }
  0x2b   :  { %2074 = shalt.err (!%p2071_p4)
}
  0x2c   :  { %s2075_s14 = scalar_lea.vmem %s48_s29, 2048  ;;  %p2080_p6 = scmp.lt.s32.totalorder %s48_s29, %s48_s29 }
  0x2d   :  { %p2076_p5 = scmp.ne.s32.totalorder %s48_s29, %s2075_s14  ;;  %p2081_p7 = scmp.lt.s32.totalorder %s2075_s14, %s2075_s14 }
  0x2f   :  { %p2082_p8 = por %p2081_p7, %p2080_p6 }
  0x31   :  { %p2083_p9 = pnand %p2082_p8, %p2076_p5 }
  0x33   :  { %2086 = shalt.err (!%p2083_p9)
}
  0x34   :  { %s2146_s0 = smov 64   ;;  %s2147_s15 = smov 4  }
  0x35   :  { %53 = dma.hbm_to_vmem [thread:$0]  %s2373_s3, 2048, %s48_s29, [#allocation6], %s2146_s0, %s2146_s0, %s2147_s15  }
  0x36   :  { %s2148_s18 = smov [#allocation8]   ;;  %s2087_s22 = scalar_lea.hbm %s2375_s5, 1024 }
  0x37   :  { %s61_s19 = sshll.u32 %s2148_s18, 4  ;;  %p2088_p10 = scmp.ne.s32.totalorder %s2375_s5, %s2087_s22  ;;  %s62_s19 = int_to_ptr.vmem [resolvable:$true] %s61_s19 }
  0x38   :  { %p2091_p11 = scmp.lt.u32.totalorder %s2087_s22, %s2375_s5 }
  0x3a   :  { %p2093_p12 = pnand %p2091_p11, %p2088_p10 }
  0x3c   :  { %2096 = shalt.err (!%p2093_p12)
}
  0x3d   :  { %s2097_s26 = scalar_lea.vmem %s62_s19, 1024  ;;  %p2102_p0 = scmp.lt.s32.totalorder %s62_s19, %s62_s19 }
  0x3e   :  { %p2098_p13 = scmp.ne.s32.totalorder %s62_s19, %s2097_s26  ;;  %p2103_p1 = scmp.lt.s32.totalorder %s2097_s26, %s2097_s26 }
  0x40   :  { %p2104_p2 = por %p2103_p1, %p2102_p0 }
  0x42   :  { %p2105_p3 = pnand %p2104_p2, %p2098_p13 }
  0x44   :  { %2108 = shalt.err (!%p2105_p3)
}
  0x45   :  { %67 = dma.hbm_to_vmem [thread:$0]  %s2375_s5, 1024, %s62_s19, [#allocation9], %s2146_s0, %s2146_s0, %s2147_s15  }
  0x46   :  { %2131 = dma.done.wait [#allocation3], 7168  }
  0x47   :  { %2132 = vsyncadd [#allocation3], 4294960128 }
  0x48   :  { %2133 = dma.done.wait [#allocation6], 14592  }
  0x49   :  { %2134 = vsyncadd [#allocation6], 4294952704 }
  0x4a   :  { %2135 = dma.done.wait [#allocation9], 1024  }
  0x4b   :  { %2136 = vsyncadd [#allocation9], 4294966272  ;;  %v1850_v0 = vld [vmem:[#allocation5 + $0x104] ss:$8 sps:$4 sm:$0xff]   ;;  %v1852_v1 = vld [vmem:[#allocation5 + $0x100] ss:$8 sps:$4 sm:$0xff]  }
  0x4c   :  { %841 = vmatprep.subr.bf16.mxu0 %v1850_v0  ;;  %v1853_v2 = vld [vmem:[#allocation5 + $0x114] ss:$8 sps:$4 sm:$0xff]   ;;  %v1855_v3 = vld [vmem:[#allocation5 + $0x110] ss:$8 sps:$4 sm:$0xff]   ;;  %v1856_v4 = vld [vmem:[#allocation5 + $0x124] ss:$8 sps:$4 sm:$0xff]  }
  0x4d   :  { %842 = vmatpush1.bf16.msra.mxu0 %v1852_v1  ;;  %v1858_v5 = vld [vmem:[#allocation5 + $0x120] ss:$8 sps:$4 sm:$0xff]   ;;  %v1859_v6 = vld [vmem:[#allocation5 + $0x134] ss:$8 sps:$4 sm:$0xff]   ;;  %v1861_v7 = vld [vmem:[#allocation5 + $0x130] ss:$8 sps:$4 sm:$0xff]  }
  0x4e   :  { %843 = vmatprep.subr.bf16.mxu0 %v1853_v2  ;;  %v1874_v8 = vld [vmem:[#allocation5 + $0x4] ss:$8 sps:$4 sm:$0xff]   ;;  %v1876_v9 = vld [vmem:[#allocation5] ss:$8 sps:$4 sm:$0xff]   ;;  %v1880_v11 = vld [vmem:[#allocation5 + $0x14] ss:$8 sps:$4 sm:$0xff]  }
  0x4f   :  { %v1862_v10 = vld [vmem:[#allocation5 + $0x144] ss:$8 sps:$4 sm:$0xff]   ;;  %768 = vmatprep.subr.bf16.mxu1 %v1874_v8  ;;  %v1882_v12 = vld [vmem:[#allocation5 + $0x10] ss:$8 sps:$4 sm:$0xff]   ;;  %v1864_v13 = vld [vmem:[#allocation5 + $0x140] ss:$8 sps:$4 sm:$0xff]  }
  0x50   :  { %769 = vmatpush1.bf16.msra.mxu1 %v1876_v9  ;;  %v1865_v14 = vld [vmem:[#allocation5 + $0x154] ss:$8 sps:$4 sm:$0xff]   ;;  %v1886_v15 = vld [vmem:[#allocation5 + $0x24] ss:$8 sps:$4 sm:$0xff]   ;;  %v1888_v16 = vld [vmem:[#allocation5 + $0x20] ss:$8 sps:$4 sm:$0xff]  }
  0x51   :  { %844 = vmatpush1.bf16.msra.mxu0 %v1855_v3  ;;  %770 = vmatprep.subr.bf16.mxu1 %v1880_v11  ;;  %v1867_v17 = vld [vmem:[#allocation5 + $0x150] ss:$8 sps:$4 sm:$0xff]   ;;  %v1892_v18 = vld [vmem:[#allocation5 + $0x34] ss:$8 sps:$4 sm:$0xff]   ;;  %v1868_v19 = vld [vmem:[#allocation5 + $0x164] ss:$8 sps:$4 sm:$0xff]  }
  0x52   :  { %845 = vmatprep.subr.bf16.mxu0 %v1856_v4  ;;  %v1894_v20 = vld [vmem:[#allocation5 + $0x30] ss:$8 sps:$4 sm:$0xff]   ;;  %v1870_v21 = vld [vmem:[#allocation5 + $0x160] ss:$8 sps:$4 sm:$0xff]   ;;  %v1898_v22 = vld [vmem:[#allocation5 + $0x44] ss:$8 sps:$4 sm:$0xff]  }
  0x53   :  { %v1871_v23 = vld [vmem:[#allocation5 + $0x174] ss:$8 sps:$4 sm:$0xff]   ;;  %v1900_v24 = vld [vmem:[#allocation5 + $0x40] ss:$8 sps:$4 sm:$0xff]   ;;  %v1873_v25 = vld [vmem:[#allocation5 + $0x170] ss:$8 sps:$4 sm:$0xff]  }
  0x54   :  { %771 = vmatpush1.bf16.msra.mxu1 %v1882_v12  ;;  %v1904_v26 = vld [vmem:[#allocation5 + $0x54] ss:$8 sps:$4 sm:$0xff]   ;;  %v1877_v27 = vld [vmem:[#allocation5 + $0x184] ss:$8 sps:$4 sm:$0xff]   ;;  %v1906_v28 = vld [vmem:[#allocation5 + $0x50] ss:$8 sps:$4 sm:$0xff]  }
  0x55   :  { %846 = vmatpush1.bf16.msra.mxu0 %v1858_v5  ;;  %772 = vmatprep.subr.bf16.mxu1 %v1886_v15  ;;  %v1879_v29 = vld [vmem:[#allocation5 + $0x180] ss:$8 sps:$4 sm:$0xff]   ;;  %v1910_v30 = vld [vmem:[#allocation5 + $0x64] ss:$8 sps:$4 sm:$0xff]   ;;  %v1883_v31 = vld [vmem:[#allocation5 + $0x194] ss:$8 sps:$4 sm:$0xff]  }
  0x56   :  { %847 = vmatprep.subr.bf16.mxu0 %v1859_v6  ;;  %v86_v32 = vld [vmem:[#allocation2 + $0x18] sm:$0xff]  ;;  %v93_v33 = vld [vmem:[#allocation2 + $0x50] sm:$0xff]  ;;  %v1912_v34 = vld [vmem:[#allocation5 + $0x60] ss:$8 sps:$4 sm:$0xff]   ;;  %vm755_vm0 = vcmask 130048   ;;  %s2151_s8 = smov [#allocation10]  }
  0x57   :  { %v142_v35 = vpack.c.bf16 %v93_v33, %v86_v32  ;;  %v1885_v36 = vld [vmem:[#allocation5 + $0x190] ss:$8 sps:$4 sm:$0xff]   ;;  %v1916_v37 = vld [vmem:[#allocation5 + $0x74] ss:$8 sps:$4 sm:$0xff]   ;;  %v1889_v38 = vld [vmem:[#allocation5 + $0x1a4] ss:$8 sps:$4 sm:$0xff]  }
  0x58   :  { %773 = vmatpush1.bf16.msra.mxu1 %v1888_v16  ;;  %v1918_v39 = vld [vmem:[#allocation5 + $0x70] ss:$8 sps:$4 sm:$0xff]   ;;  %v1891_v40 = vld [vmem:[#allocation5 + $0x1a0] ss:$8 sps:$4 sm:$0xff]   ;;  %v1922_v41 = vld [vmem:[#allocation5 + $0x84] ss:$8 sps:$4 sm:$0xff]  }
  0x59   :  { %848 = vmatpush1.bf16.msra.mxu0 %v1861_v7  ;;  %774 = vmatprep.subr.bf16.mxu1 %v1892_v18  ;;  %v1895_v42 = vld [vmem:[#allocation5 + $0x1b4] ss:$8 sps:$4 sm:$0xff]   ;;  %v1924_v43 = vld [vmem:[#allocation5 + $0x80] ss:$8 sps:$4 sm:$0xff]   ;;  %v1897_v44 = vld [vmem:[#allocation5 + $0x1b0] ss:$8 sps:$4 sm:$0xff]  }
  0x5a   :  { %849 = vmatprep.subr.bf16.mxu0 %v1862_v10  ;;  %873 = vmatprep.mubr.bf16.mxu0 %v142_v35  ;;  %v1928_v45 = vld [vmem:[#allocation5 + $0x94] ss:$8 sps:$4 sm:$0xff]   ;;  %v1901_v46 = vld [vmem:[#allocation5 + $0x1c4] ss:$8 sps:$4 sm:$0xff]   ;;  %v1930_v47 = vld [vmem:[#allocation5 + $0x90] ss:$8 sps:$4 sm:$0xff]  }
  0x5b   :  { %v1903_v48 = vld [vmem:[#allocation5 + $0x1c0] ss:$8 sps:$4 sm:$0xff]   ;;  %v1934_v49 = vld [vmem:[#allocation5 + $0xa4] ss:$8 sps:$4 sm:$0xff]   ;;  %v1907_v50 = vld [vmem:[#allocation5 + $0x1d4] ss:$8 sps:$4 sm:$0xff]  }
  0x5c   :  { %775 = vmatpush1.bf16.msra.mxu1 %v1894_v20  ;;  %v1936_v51 = vld [vmem:[#allocation5 + $0xa0] ss:$8 sps:$4 sm:$0xff]   ;;  %v1909_v52 = vld [vmem:[#allocation5 + $0x1d0] ss:$8 sps:$4 sm:$0xff]   ;;  %v1940_v53 = vld [vmem:[#allocation5 + $0xb4] ss:$8 sps:$4 sm:$0xff]  }
  0x5d   :  { %850 = vmatpush1.bf16.msra.mxu0 %v1864_v13  ;;  %776 = vmatprep.subr.bf16.mxu1 %v1898_v22  ;;  %v1913_v54 = vld [vmem:[#allocation5 + $0x1e4] ss:$8 sps:$4 sm:$0xff]   ;;  %v1942_v55 = vld [vmem:[#allocation5 + $0xb0] ss:$8 sps:$4 sm:$0xff]   ;;  %v1915_v57 = vld [vmem:[#allocation5 + $0x1e0] ss:$8 sps:$4 sm:$0xff]  }
  0x5e   :  { %851 = vmatprep.subr.bf16.mxu0 %v1865_v14  ;;  %v84_v56 = vld [vmem:[#allocation2 + $0x8] sm:$0xff]  ;;  %v91_v59 = vld [vmem:[#allocation2 + $0x40] sm:$0xff]  ;;  %v1919_v60 = vld [vmem:[#allocation5 + $0x1f4] ss:$8 sps:$4 sm:$0xff]   ;;  %s1516_s9 = sshll.u32 %s2151_s8, 4  ;;  %s1517_s9 = int_to_ptr.vmem [resolvable:$true] %s1516_s9 }
  0x5f   :  { %v1946_v58 = vld [vmem:[#allocation5 + $0xc4] ss:$8 sps:$4 sm:$0xff]   ;;  %v140_v61 = vpack.c.bf16 %v91_v59, %v84_v56  ;;  %v1921_v62 = vld [vmem:[#allocation5 + $0x1f0] ss:$8 sps:$4 sm:$0xff]   ;;  %v1948_v0 = vld [vmem:[#allocation5 + $0xc0] ss:$8 sps:$4 sm:$0xff]   ;;  %p2114_p5 = scmp.lt.s32.totalorder %s1517_s9, %s1517_s9 }
  0x60   :  { %777 = vmatpush1.bf16.msra.mxu1 %v1900_v24  ;;  %v85_v63 = vld [vmem:[#allocation2 + $0x10] sm:$0xff]  ;;  %v92_v1 = vld [vmem:[#allocation2 + $0x48] sm:$0xff]  ;;  %v107_v5 = vld [vmem:[#allocation2 + $0xc0] sm:$0xff] }
  0x61   :  { %852 = vmatpush1.bf16.msra.mxu0 %v1867_v17  ;;  %778 = vmatprep.subr.bf16.mxu1 %v1904_v26  ;;  %v1952_v2 = vld [vmem:[#allocation5 + $0xd4] ss:$8 sps:$4 sm:$0xff]   ;;  %v1927_v3 = vld [vmem:[#allocation5 + $0x204] ss:$8 sps:$4 sm:$0xff]   ;;  %v141_v6 = vpack.c.bf16 %v92_v1, %v85_v63  ;;  %v1954_v7 = vld [vmem:[#allocation5 + $0xd0] ss:$8 sps:$4 sm:$0xff]  }
  0x62   :  { %853 = vmatprep.subr.bf16.mxu0 %v1868_v19  ;;  %800 = vmatprep.mubr.bf16.mxu1 %v140_v61  ;;  %v100_v4 = vld [vmem:[#allocation2 + $0x88] sm:$0xff]  ;;  %v1933_v10 = vld [vmem:[#allocation5 + $0x214] ss:$8 sps:$4 sm:$0xff]   ;;  %v1931_v12 = vld [vmem:[#allocation5 + $0x210] ss:$8 sps:$4 sm:$0xff]  }
  0x63   :  { %v1925_v8 = vld [vmem:[#allocation5 + $0x200] ss:$8 sps:$4 sm:$0xff]   ;;  %v1958_v9 = vld [vmem:[#allocation5 + $0xe4] ss:$8 sps:$4 sm:$0xff]   ;;  %v149_v11 = vpack.c.bf16 %v107_v5, %v100_v4  ;;  %v1964_v15 = vld [vmem:[#allocation5 + $0xf4] ss:$8 sps:$4 sm:$0xff]  }
  0x64   :  { %779 = vmatpush1.bf16.msra.mxu1 %v1906_v28  ;;  %v1939_v13 = vld [vmem:[#allocation5 + $0x224] ss:$8 sps:$4 sm:$0xff]   ;;  %v1960_v14 = vld [vmem:[#allocation5 + $0xe0] ss:$8 sps:$4 sm:$0xff]   ;;  %v106_v17 = vld [vmem:[#allocation2 + $0xb8] sm:$0xff] }
  0x65   :  { %854 = vmatpush1.bf16.msra.mxu0 %v1870_v21  ;;  %780 = vmatprep.subr.bf16.mxu1 %v1910_v30  ;;  %v99_v16 = vld [vmem:[#allocation2 + $0x80] sm:$0xff]  ;;  %v114_v18 = vld [vmem:[#allocation2 + $0xf8] sm:$0xff]  ;;  %v121_v20 = vld [vmem:[#allocation2 + $0x130] sm:$0xff] }
  0x66   :  { %855 = vmatprep.subr.bf16.mxu0 %v1871_v23  ;;  %v1937_v19 = vld [vmem:[#allocation5 + $0x220] ss:$8 sps:$4 sm:$0xff]   ;;  %v1966_v21 = vld [vmem:[#allocation5 + $0xf0] ss:$8 sps:$4 sm:$0xff]   ;;  %v148_v24 = vpack.c.bf16 %v106_v17, %v99_v16  ;;  %v1945_v28 = vld [vmem:[#allocation5 + $0x234] ss:$8 sps:$4 sm:$0xff]  }
  0x67   :  { %v83_v22 = vld [vmem:[#allocation2] sm:$0xff]  ;;  %v90_v23 = vld [vmem:[#allocation2 + $0x38] sm:$0xff]  ;;  %v120_v35 = vld [vmem:[#allocation2 + $0x128] sm:$0xff] }
  0x68   :  { %781 = vmatpush1.bf16.msra.mxu1 %v1912_v34  ;;  %v98_v26 = vld [vmem:[#allocation2 + $0x78] sm:$0xff]  ;;  %v139_v30 = vpack.c.bf16 %v90_v23, %v83_v22  ;;  %v1973_v32 = vld [vmem:[#allocation5 + $0x300] ss:$8 sps:$4 sm:$0xff]   ;;  %v113_v34 = vld [vmem:[#allocation2 + $0xf0] sm:$0xff] }
  0x69   :  { %856 = vmatpush1.bf16.msra.mxu0 %v1873_v25  ;;  %782 = vmatprep.subr.bf16.mxu1 %v1916_v37  ;;  %v1975_v25 = vld [vmem:[#allocation5 + $0x304] ss:$8 sps:$4 sm:$0xff]   ;;  %v118_v56 = vld [vmem:[#allocation2 + $0x118] sm:$0xff]  ;;  %v133_v59 = vld [vmem:[#allocation2 + $0x190] sm:$0xff] }
  0x6a   :  { %857 = vmatprep.subr.bf16.mxu0 %v1877_v27  ;;  %v105_v27 = vld [vmem:[#allocation2 + $0xb0] sm:$0xff]  ;;  %v128_v37 = vld [vmem:[#allocation2 + $0x168] sm:$0xff] }
  0x6b   :  { %v147_v33 = vpack.c.bf16 %v105_v27, %v98_v26  ;;  %v1967_v63 = vld [vmem:[#allocation5 + $0x270] ss:$8 sps:$4 sm:$0xff]   ;;  %v1972_v1 = vld [vmem:[#allocation5 + $0x284] ss:$8 sps:$4 sm:$0xff]   ;;  %v1970_v5 = vld [vmem:[#allocation5 + $0x280] ss:$8 sps:$4 sm:$0xff]  }
  0x6c   :  { %783 = vmatpush1.bf16.msra.mxu1 %v1918_v39  ;;  %v97_v39 = vld [vmem:[#allocation2 + $0x70] sm:$0xff]  ;;  %v132_v4 = vld [vmem:[#allocation2 + $0x188] sm:$0xff] }
  0x6d   :  { %858 = vmatpush1.bf16.msra.mxu0 %v1879_v29  ;;  %784 = vmatprep.subr.bf16.mxu1 %v1922_v41  ;;  %v156_v29 = vpack.c.bf16 %v121_v20, %v114_v18  ;;  %v155_v41 = vpack.c.bf16 %v120_v35, %v113_v34  ;;  %v1982_v16 = vld [vmem:[#allocation5 + $0x2b0] ss:$8 sps:$4 sm:$0xff]   ;;  %v1987_v17 = vld [vmem:[#allocation5 + $0x2c4] ss:$8 sps:$4 sm:$0xff]   ;;  %v1985_v20 = vld [vmem:[#allocation5 + $0x2c0] ss:$8 sps:$4 sm:$0xff]  }
  0x6e   :  { %859 = vmatprep.subr.bf16.mxu0 %v1883_v31  ;;  %v1943_v31 = vld [vmem:[#allocation5 + $0x230] ss:$8 sps:$4 sm:$0xff]   ;;  %v103_v18 = vld [vmem:[#allocation2 + $0xa0] sm:$0xff]  ;;  %v124_v26 = vld [vmem:[#allocation2 + $0x148] sm:$0xff] }
  0x6f   :  { %v1988_v23 = vld [vmem:[#allocation5 + $0x2d0] ss:$8 sps:$4 sm:$0xff]   ;;  %v1991_v27 = vld [vmem:[#allocation5 + $0x2e0] ss:$8 sps:$4 sm:$0xff]  }
  0x70   :  { %785 = vmatpush1.bf16.msra.mxu1 %v1924_v43  ;;  %v112_v43 = vld [vmem:[#allocation2 + $0xe8] sm:$0xff]  ;;  %v109_v34 = vld [vmem:[#allocation2 + $0xd0] sm:$0xff] }
  0x71   :  { %860 = vmatpush1.bf16.msra.mxu0 %v1885_v36  ;;  %786 = vmatprep.subr.bf16.mxu1 %v1928_v45  ;;  %v1951_v36 = vld [vmem:[#allocation5 + $0x244] ss:$8 sps:$4 sm:$0xff]  }
  0x72   :  { %861 = vmatprep.subr.bf16.mxu0 %v1889_v38  ;;  %v135_v38 = vld [vmem:[#allocation2 + $0x1a0] sm:$0xff] }
  0x73   :  { %v163_v45 = vpack.c.bf16 %v135_v38, %v128_v37  ;;  %v138_v37 = vld [vmem:[#allocation2 + $0x1b8] sm:$0xff] }
  0x74   :  { %787 = vmatpush1.bf16.msra.mxu1 %v1930_v47 }
  0x75   :  { %862 = vmatpush1.bf16.msra.mxu0 %v1891_v40  ;;  %788 = vmatprep.subr.bf16.mxu1 %v1934_v49  ;;  %v104_v40 = vld [vmem:[#allocation2 + $0xa8] sm:$0xff] }
  0x76   :  { %863 = vmatprep.subr.bf16.mxu0 %v1895_v42  ;;  %v1949_v42 = vld [vmem:[#allocation5 + $0x240] ss:$8 sps:$4 sm:$0xff]   ;;  %v146_v47 = vpack.c.bf16 %v104_v40, %v97_v39  ;;  %v1963_v49 = vld [vmem:[#allocation5 + $0x264] ss:$8 sps:$4 sm:$0xff]   ;;  %v101_v40 = vld [vmem:[#allocation2 + $0x90] sm:$0xff] }
  0x78   :  { %789 = vmatpush1.bf16.msra.mxu1 %v1936_v51  ;;  %v127_v51 = vld [vmem:[#allocation2 + $0x160] sm:$0xff] }
  0x79   :  { %864 = vmatpush1.bf16.msra.mxu0 %v1897_v44  ;;  %790 = vmatprep.subr.bf16.mxu1 %v1940_v53  ;;  %v119_v44 = vld [vmem:[#allocation2 + $0x120] sm:$0xff]  ;;  %v88_v53 = vld [vmem:[#allocation2 + $0x28] sm:$0xff] }
  0x7a   :  { %865 = vmatprep.subr.bf16.mxu0 %v1901_v46  ;;  %v1957_v46 = vld [vmem:[#allocation5 + $0x254] ss:$8 sps:$4 sm:$0xff]  }
  0x7c   :  { %791 = vmatpush1.bf16.msra.mxu1 %v1942_v55  ;;  %v111_v55 = vld [vmem:[#allocation2 + $0xe0] sm:$0xff] }
  0x7d   :  { %866 = vmatpush1.bf16.msra.mxu0 %v1903_v48  ;;  %792 = vmatprep.subr.bf16.mxu1 %v1946_v58  ;;  %v1955_v48 = vld [vmem:[#allocation5 + $0x250] ss:$8 sps:$4 sm:$0xff]  }
  0x7e   :  { %867 = vmatprep.subr.bf16.mxu0 %v1907_v50  ;;  %v154_v50 = vpack.c.bf16 %v119_v44, %v112_v43  ;;  %v126_v58 = vld [vmem:[#allocation2 + $0x158] sm:$0xff]  ;;  %v123_v43 = vld [vmem:[#allocation2 + $0x140] sm:$0xff] }
  0x80   :  { %793 = vmatpush1.bf16.msra.mxu1 %v1948_v0  ;;  %v153_v0 = vpack.c.bf16 %v118_v56, %v111_v55  ;;  %v1997_v55 = vld [vmem:[#allocation7 + $0x40] sm:$0xff]  }
  0x81   :  { %868 = vmatpush1.bf16.msra.mxu0 %v1909_v52  ;;  %794 = vmatprep.subr.bf16.mxu1 %v1952_v2  ;;  %v134_v52 = vld [vmem:[#allocation2 + $0x198] sm:$0xff]  ;;  %v161_v2 = vpack.c.bf16 %v133_v59, %v126_v58  ;;  %v1998_v56 = vld [vmem:[#allocation7] sm:$0xff]   ;;  %v2001_v59 = vld [vmem:[#allocation7 + $0x50] sm:$0xff]  }
  0x82   :  { %869 = vmatprep.subr.bf16.mxu0 %v1913_v54  ;;  %v95_v54 = vld [vmem:[#allocation2 + $0x60] sm:$0xff]  ;;  %v162_v61 = vpack.c.bf16 %v134_v52, %v127_v51  ;;  %v129_v52 = vld [vmem:[#allocation2 + $0x170] sm:$0xff]  ;;  %v2000_v58 = vld [vmem:[#allocation7 + $0x8] sm:$0xff]  }
  0x84   :  { %795 = vmatpush1.bf16.msra.mxu1 %v1954_v7  ;;  %v1976_v7 = vld [vmem:[#allocation5 + $0x290] ss:$8 sps:$4 sm:$0xff]  }
  0x85   :  { %870 = vmatpush1.bf16.msra.mxu0 %v1915_v57  ;;  %796 = vmatprep.subr.bf16.mxu1 %v1958_v9  ;;  %v1961_v57 = vld [vmem:[#allocation5 + $0x260] ss:$8 sps:$4 sm:$0xff]   ;;  %v1981_v9 = vld [vmem:[#allocation5 + $0x2a4] ss:$8 sps:$4 sm:$0xff]  }
  0x86   :  { %871 = vmatprep.subr.bf16.mxu0 %v1919_v60  ;;  %v1969_v60 = vld [vmem:[#allocation5 + $0x274] ss:$8 sps:$4 sm:$0xff]  }
  0x88   :  { %797 = vmatpush1.bf16.msra.mxu1 %v1960_v14  ;;  %v1984_v14 = vld [vmem:[#allocation5 + $0x2b4] ss:$8 sps:$4 sm:$0xff]  }
  0x89   :  { %872 = vmatpush1.bf16.msra.mxu0 %v1921_v62  ;;  %798 = vmatprep.subr.bf16.mxu1 %v1964_v15  ;;  %v144_v62 = vpack.c.bf16 %v95_v54, %v88_v53  ;;  %v136_v53 = vld [vmem:[#allocation2 + $0x1a8] sm:$0xff] }
  0x8a   :  { %914 = vmatprep.subr.bf16.mxu0 %v1927_v3  ;;  %v125_v3 = vld [vmem:[#allocation2 + $0x150] sm:$0xff]  ;;  %v164_v54 = vpack.c.bf16 %v136_v53, %v129_v52 }
  0x8c   :  { %874 = vmatmul.mubr.bf16.vlgmr.msra.gmra.mrb[0].mxu0 %v141_v6  ;;  %799 = vmatpush1.bf16.msra.mxu1 %v1966_v21  ;;  %v1978_v6 = vld [vmem:[#allocation5 + $0x294] ss:$8 sps:$4 sm:$0xff]  }
  0x8d   :  { %915 = vmatpush1.bf16.msra.mxu0 %v1925_v8  ;;  %883 = vmatprep.mubr.bf16.mxu0 %v149_v11  ;;  %v160_v8 = vpack.c.bf16 %v132_v4, %v125_v3  ;;  %v89_v11 = vld [vmem:[#allocation2 + $0x30] sm:$0xff]  ;;  %v2009_v3 = vld [vmem:[#allocation7 + $0x70] sm:$0xff]  }
  0x8e   :  { %916 = vmatprep.subr.bf16.mxu0 %v1933_v10  ;;  %987 = vmatprep.subr.bf16.mxu1 %v1975_v25  ;;  %v2149_v10 = vmov 0   ;;  %v1990_v21 = vld [vmem:[#allocation5 + $0x2d4] ss:$8 sps:$4 sm:$0xff]   ;;  %v2010_v4 = vld [vmem:[#allocation7 + $0x30] sm:$0xff]  }
  0x8f   :  { %801 = vmatmul.mubr.bf16.vlgmr.msra.gmra.mrb[0].mxu1 %v139_v30  ;;  %v117_v25 = vld [vmem:[#allocation2 + $0x110] sm:$0xff] }
  0x90   :  { %988 = vmatpush1.bf16.msra.mxu1 %v1973_v32  ;;  %810 = vmatprep.mubr.bf16.mxu1 %v147_v33  ;;  %v1994_v30 = vld [vmem:[#allocation5 + $0x2f0] ss:$8 sps:$4 sm:$0xff]  }
  0x91   :  { %917 = vmatpush1.bf16.msra.mxu0 %v1931_v12  ;;  %v96_v12 = vld [vmem:[#allocation2 + $0x68] sm:$0xff]  ;;  %v94_v32 = vld [vmem:[#allocation2 + $0x58] sm:$0xff]  ;;  %1697 = vmatprep.subr.bf16.mxu1 %v1997_v55 }
  0x92   :  { %918 = vmatprep.subr.bf16.mxu0 %v1939_v13  ;;  %v1979_v13 = vld [vmem:[#allocation5 + $0x2a0] ss:$8 sps:$4 sm:$0xff]   ;;  %v145_v15 = vpack.c.bf16 %v96_v12, %v89_v11  ;;  %v102_v33 = vld [vmem:[#allocation2 + $0x98] sm:$0xff] }
  0x93   :  { %v151_v38 = vpack.c.bf16 %v109_v34, %v102_v33  ;;  %v1081_v33 = vlaneseq }
  0x94   :  { %884 = vmatmul.mubr.bf16.gmra.mrb[4].mxu0 %v148_v24  ;;  %v1993_v24 = vld [vmem:[#allocation5 + $0x2e4] ss:$8 sps:$4 sm:$0xff]  }
  0x95   :  { %919 = vmatpush1.bf16.msra.mxu0 %v1937_v19  ;;  %893 = vmatprep.mubr.bf16.mxu0 %v156_v29  ;;  %v110_v19 = vld [vmem:[#allocation2 + $0xd8] sm:$0xff]  ;;  %v159_v29 = vpack.c.bf16 %v124_v26, %v117_v25 }
  0x96   :  { %920 = vmatprep.subr.bf16.mxu0 %v1945_v28  ;;  %v152_v22 = vpack.c.bf16 %v110_v19, %v103_v18  ;;  %v1996_v28 = vld [vmem:[#allocation5 + $0x2f4] ss:$8 sps:$4 sm:$0xff]  }
  0x97   :  { %811 = vmatmul.mubr.bf16.gmra.mrb[4].mxu1 %v146_v47  ;;  %v122_v47 = vld [vmem:[#allocation2 + $0x138] sm:$0xff] }
  0x98   :  { %820 = vmatprep.mubr.bf16.mxu1 %v154_v50 }
  0x99   :  { %921 = vmatpush1.bf16.msra.mxu0 %v1943_v31  ;;  %v87_v31 = vld [vmem:[#allocation2 + $0x20] sm:$0xff] }
  0x9a   :  { %922 = vmatprep.subr.bf16.mxu0 %v1951_v36  ;;  %v143_v35 = vpack.c.bf16 %v94_v32, %v87_v31  ;;  %v131_v36 = vld [vmem:[#allocation2 + $0x180] sm:$0xff]  ;;  %v2150_v31 = vmov 1966171168  }
  0x9b   :  { %v166_v39 = vpack.c.bf16 %v138_v37, %v131_v36  ;;  %v1079_v32 = vunpack.c.l.s4 %v2150_v31  ;;  %v1082_v37 = vshrl.u32 %v1081_v33, 7 }
  0x9c   :  { %894 = vmatmul.mubr.bf16.gmra.mrb[8].mxu0 %v155_v41  ;;  %v108_v41 = vld [vmem:[#allocation2 + $0xc8] sm:$0xff] }
  0x9d   :  { %923 = vmatpush1.bf16.msra.mxu0 %v1949_v42  ;;  %903 = vmatprep.mubr.bf16.mxu0 %v163_v45  ;;  %v116_v42 = vld [vmem:[#allocation2 + $0x108] sm:$0xff]  ;;  %v150_v44 = vpack.c.bf16 %v108_v41, %v101_v40  ;;  %v1080_v36 = vunpack.c.0.s8 %v1079_v32  ;;  %v1632_v40 = vld.sshfl [vmem:[%s2372_s2] sm:$0x11 pattern:$0x75316420]  ;;  %v2292_v53 = vsub.s32 0, %v1082_v37 }
  0x9e   :  { %924 = vmatprep.subr.bf16.mxu0 %v1957_v46  ;;  %v158_v45 = vpack.c.bf16 %v123_v43, %v116_v42  ;;  %v115_v46 = vld [vmem:[#allocation2 + $0x100] sm:$0xff]  ;;  %v1077_v42 = vcombine.high %v1632_v40, %v1632_v40 }
  0x9f   :  { %821 = vmatmul.mubr.bf16.gmra.mrb[8].mxu1 %v153_v0  ;;  %v157_v50 = vpack.c.bf16 %v122_v47, %v115_v46  ;;  %v2006_v0 = vld [vmem:[#allocation7 + $0x20] sm:$0xff]   ;;  %v1083_v41 = vsub.s32 %v1080_v36, %v1082_v37 }
  0xa0   :  { %830 = vmatprep.mubr.bf16.mxu1 %v161_v2  ;;  %v2008_v2 = vld [vmem:[#allocation7 + $0x28] sm:$0xff]  }
  0xa1   :  { %925 = vmatpush1.bf16.msra.mxu0 %v1955_v48  ;;  %v130_v48 = vld [vmem:[#allocation2 + $0x178] sm:$0xff]  ;;  %v1091_v47 = vrot.slane %v1077_v42, %v1083_v41 }
  0xa2   :  { %926 = vmatprep.subr.bf16.mxu0 %v1963_v49  ;;  %v137_v49 = vld [vmem:[#allocation2 + $0x1b0] sm:$0xff] }
  0xa3   :  { %v165_v51 = vpack.c.bf16 %v137_v49, %v130_v48 }
  0xa4   :  { %904 = vmatmul.mubr.bf16.gmra.mrb[12].mxu0 %v162_v61  ;;  %v2003_v61 = vld [vmem:[#allocation7 + $0x58] sm:$0xff]  }
  0xa5   :  { %927 = vmatpush1.bf16.msra.mxu0 %v1961_v57  ;;  %946 = vmatprep.mubr.bf16.mxu0 %v144_v62  ;;  %v1999_v57 = vld [vmem:[#allocation7 + $0x48] sm:$0xff]   ;;  %v2004_v62 = vld [vmem:[#allocation7 + $0x18] sm:$0xff]  }
  0xa6   :  { %928 = vmatprep.subr.bf16.mxu0 %v1969_v60  ;;  %v2002_v60 = vld [vmem:[#allocation7 + $0x10] sm:$0xff]  }
  0xa7   :  { %831 = vmatmul.mubr.bf16.gmra.mrb[12].mxu1 %v160_v8  ;;  %v2256_v8 = vld [vmem:[#allocation8 + $0x8] sm:$0xff]  }
  0xa8   :  { %1019 = vmatprep.mubr.bf16.mxu1 %v2149_v10 }
  0xa9   :  { %929 = vmatpush1.bf16.msra.mxu0 %v1967_v63  ;;  %v2005_v63 = vld [vmem:[#allocation7 + $0x60] sm:$0xff]  }
  0xaa   :  { %930 = vmatprep.subr.bf16.mxu0 %v1972_v1  ;;  %v2007_v1 = vld [vmem:[#allocation7 + $0x68] sm:$0xff]  }
  0xad   :  { %931 = vmatpush1.bf16.msra.mxu0 %v1970_v5  ;;  %v2011_v5 = vld [vmem:[#allocation7 + $0x78] sm:$0xff]  }
  0xae   :  { %932 = vmatprep.subr.bf16.mxu0 %v1978_v6  ;;  %v2012_v6 = vld [vmem:[#allocation7 + $0x38] sm:$0xff]  }
  0xaf   :  { %1628 = vmatmul.mubr.msk.bf16.vlgmr.msra.gmra.mrb[16].mxu1 %vm755_vm0, %v145_v15 }
  0xb0   :  { %1029 = vmatprep.mubr.bf16.mxu1 %v2149_v10  ;;  %1698 = vmatpush3.bf16.msra.mxu1 %v1998_v56  ;;  %v1100_v56 = vpack.i.b16 %v1091_v47, %v1091_v47 }
  0xb1   :  { %933 = vmatpush1.bf16.msra.mxu0 %v1976_v7  ;;  %1699 = vmatprep.subr.bf16.mxu1 %v1999_v57  ;;  %v2254_v7 = vld [vmem:[#allocation8] sm:$0xff]  }
  0xb2   :  { %934 = vmatprep.subr.bf16.mxu0 %v1981_v9  ;;  %v2262_v9 = vld [vmem:[#allocation8 + $0x10] sm:$0xff]  }
  0xb4   :  { %1700 = vmatpush3.bf16.msra.mxu1 %v2000_v58 }
  0xb5   :  { %935 = vmatpush1.bf16.msra.mxu0 %v1979_v13  ;;  %1701 = vmatprep.subr.bf16.mxu1 %v2001_v59 }
  0xb6   :  { %936 = vmatprep.subr.bf16.mxu0 %v1984_v14 }
  0xb7   :  { %1629 = vmatmul.mubr.msk.bf16.gmra.mrb[20].mxu1 %vm755_vm0, %v152_v22 }
  0xb8   :  { %1039 = vmatprep.mubr.bf16.mxu1 %v2149_v10  ;;  %1702 = vmatpush3.bf16.msra.mxu1 %v2002_v60 }
  0xb9   :  { %937 = vmatpush1.bf16.msra.mxu0 %v1982_v16  ;;  %1703 = vmatprep.subr.bf16.mxu1 %v2003_v61 }
  0xba   :  { %938 = vmatprep.subr.bf16.mxu0 %v1987_v17 }
  0xbc   :  { %1704 = vmatpush3.bf16.msra.mxu1 %v2004_v62 }
  0xbd   :  { %939 = vmatpush1.bf16.msra.mxu0 %v1985_v20  ;;  %1705 = vmatprep.subr.bf16.mxu1 %v2005_v63 }
  0xbe   :  { %940 = vmatprep.subr.bf16.mxu0 %v1990_v21 }
  0xbf   :  { %1630 = vmatmul.mubr.msk.bf16.gmra.mrb[24].mxu1 %vm755_vm0, %v159_v29 }
  0xc0   :  { %1049 = vmatprep.mubr.bf16.mxu1 %v2149_v10  ;;  %1706 = vmatpush3.bf16.msra.mxu1 %v2006_v0 }
  0xc1   :  { %941 = vmatpush1.bf16.msra.mxu0 %v1988_v23  ;;  %1707 = vmatprep.subr.bf16.mxu1 %v2007_v1 }
  0xc2   :  { %942 = vmatprep.subr.bf16.mxu0 %v1993_v24 }
  0xc4   :  { %1708 = vmatpush3.bf16.msra.mxu1 %v2008_v2 }
  0xc5   :  { %943 = vmatpush1.bf16.msra.mxu0 %v1991_v27  ;;  %1709 = vmatprep.subr.bf16.mxu1 %v2009_v3 }
  0xc6   :  { %944 = vmatprep.subr.bf16.mxu0 %v1996_v28 }
  0xc7   :  { %1631 = vmatmul.mubr.msk.bf16.gmra.mrb[28].mxu1 %vm755_vm0, %v166_v39 }
  0xc8   :  { %1710 = vmatpush3.bf16.msra.mxu1 %v2010_v4  ;;  %v2304_v4 = vrot.slane %v1100_v56, %v2292_v53 }
  0xc9   :  { %945 = vmatpush1.bf16.msra.mxu0 %v1994_v30  ;;  %1711 = vmatprep.subr.bf16.mxu1 %v2011_v5 }
  0xca   :  { %1749 = vmatprep.subr.bf16.mxu0 %v2254_v7 }
  0xcc   :  { %947 = vmatmul.mubr.bf16.vlgmr.msra.gmra.mrb[0].mxu0 %v143_v35  ;;  %1712 = vmatpush3.bf16.msra.mxu1 %v2012_v6 }
  0xcd   :  { %956 = vmatprep.mubr.bf16.mxu0 %v151_v38  ;;  %1773 = vmatprep.subr.bf16.mxu1 %v2254_v7 }
  0xce   :  { %1750 = vmatpush3.bf16.msra.mxu0 %v2254_v7 }
  0xcf   :  { %1751 = vmatprep.subr.bf16.mxu0 %v2256_v8 }
  0xd2   :  { %1752 = vmatpush3.bf16.msra.mxu0 %v2256_v8 }
  0xd3   :  { %1753 = vmatprep.subr.bf16.mxu0 %v2262_v9 }
  0xd4   :  { %957 = vmatmul.mubr.bf16.gmra.mrb[4].mxu0 %v150_v44 }
  0xd5   :  { %966 = vmatprep.mubr.bf16.mxu0 %v158_v45  ;;  %v1084_v45 = vrot.slane %v1632_v40, %v1083_v41 }
  0xd6   :  { %1754 = vmatpush3.bf16.msra.mxu0 %v2262_v9 }
  0xd7   :  { %v1093_v52 = vpack.i.b16 %v1084_v45, %v1084_v45 }
  0xd9   :  { %v2299_v1 = vrot.slane %v1093_v52, %v2292_v53 }
  0xdc   :  { %967 = vmatmul.mubr.bf16.gmra.mrb[8].mxu0 %v157_v50 }
  0xdd   :  { %976 = vmatprep.mubr.bf16.mxu0 %v165_v51 }
  0xe4   :  { %977 = vmatmul.mubr.bf16.gmra.mrb[12].mxu0 %v164_v54 }
 0x162   :  { %v802_v11 = vpop.f32.mrb[0].mxu1 }
 0x163   :  { %v804_v12 = vpop.f32.mrb[1].mxu1 }
 0x164   :  { %v806_v13 = vpop.f32.mrb[2].mxu1 }
 0x165   :  { %v808_v14 = vpop.f32.mrb[3].mxu1 }
 0x16a   :  { %v812_v15 = vpop.f32.mrb[4].mxu1 }
 0x16b   :  { %v814_v16 = vpop.f32.mrb[5].mxu1 }
 0x16c   :  { %v2267_v17 = vpop.f32.mrb[6].mxu1 }
 0x16d   :  { %v2269_v18 = vpop.f32.mrb[7].mxu1 }
 0x172   :  { %v2271_v19 = vpop.f32.mrb[8].mxu1 }
 0x173   :  { %v2273_v20 = vpop.f32.mrb[9].mxu1 }
 0x174   :  { %v2275_v21 = vpop.f32.mrb[10].mxu1 }
 0x175   :  { %v2277_v22 = vpop.f32.mrb[11].mxu1 }
 0x17a   :  { %v2279_v23 = vpop.f32.mrb[12].mxu1 }
 0x17b   :  { %v2281_v24 = vpop.f32.mrb[13].mxu1 }
 0x17c   :  { %v2283_v25 = vpop.f32.mrb[14].mxu1 }
 0x17d   :  { %v2285_v26 = vpop.f32.mrb[15].mxu1 }
 0x182   :  { %v1021_v27 = vpop.f32.mrb[16].mxu1 }
 0x183   :  { %v1023_v28 = vpop.f32.mrb[17].mxu1 }
 0x184   :  { %v1025_v29 = vpop.f32.mrb[18].mxu1 }
 0x185   :  { %v1027_v30 = vpop.f32.mrb[19].mxu1 }
 0x18a   :  { %v1031_v34 = vpop.f32.mrb[20].mxu1 }
 0x18b   :  { %v1033_v35 = vpop.f32.mrb[21].mxu1 }
 0x18c   :  { %v1035_v38 = vpop.f32.mrb[22].mxu1 }
 0x18d   :  { %v1037_v39 = vpop.f32.mrb[23].mxu1 }
 0x192   :  { %v1041_v43 = vpop.f32.mrb[24].mxu1 }
 0x193   :  { %v1043_v44 = vpop.f32.mrb[25].mxu1 }
 0x194   :  { %v1045_v46 = vpop.f32.mrb[26].mxu1 }
 0x195   :  { %v2290_v48 = vpop.f32.mrb[27].mxu1 }
 0x19a   :  { %v2294_v60 = vpop.f32.mrb[28].mxu1 }
 0x19b   :  { %v2296_v63 = vpop.f32.mrb[29].mxu1 }
 0x19c   :  { %v2301_v2 = vpop.f32.mrb[30].mxu1 }
 0x19d   :  { %v2306_v5 = vpop.f32.mrb[31].mxu1 }
 0x19f   :  { %v948_v49 = vpop.f32.mrb[0].mxu0 }
 0x1a0   :  { %v1789_v50 = vadd.f32 %v948_v49, %v802_v11  ;;  %v950_v51 = vpop.f32.mrb[1].mxu0 }
 0x1a1   :  { %v1791_v54 = vadd.f32 %v950_v51, %v804_v12  ;;  %v952_v55 = vpop.f32.mrb[2].mxu0 }
 0x1a2   :  { %v1790_v57 = vadd.f32 %v1789_v50, %v1021_v27  ;;  %v1793_v58 = vadd.f32 %v952_v55, %v806_v13  ;;  %v954_v59 = vpop.f32.mrb[3].mxu0 }
 0x1a3   :  { %v1792_v61 = vadd.f32 %v1791_v54, %v1023_v28  ;;  %v1795_v62 = vadd.f32 %v954_v59, %v808_v14 }
 0x1a4   :  { %v1794_v0 = vadd.f32 %v1793_v58, %v1025_v29 }
 0x1a5   :  { %v1796_v3 = vadd.f32 %v1795_v62, %v1027_v30 }
 0x1a6   :  { %v1060_v6 = vpack.c.bf16 %v1794_v0, %v1790_v57 }
 0x1a7   :  { %v1061_v11 = vpack.c.bf16 %v1796_v3, %v1792_v61  ;;  %v958_v12 = vpop.f32.mrb[4].mxu0 }
 0x1a8   :  { %v1106_v13 = vadd.bf16 %v2299_v1, %v1060_v6  ;;  %v1797_v14 = vadd.f32 %v958_v12, %v812_v15  ;;  %v960_v27 = vpop.f32.mrb[5].mxu0  ;;  %v2016_v12 = vld [vmem:[#allocation8 + $0x18] sm:$0xff]  }
 0x1a9   :  { %v1799_v28 = vadd.f32 %v960_v27, %v814_v16  ;;  %v962_v29 = vpop.f32.mrb[6].mxu0  ;;  %v1107_v31 = vadd.bf16 %v2304_v4, %v1061_v11  ;;  %1755 = vmatprep.subr.bf16.mxu0 %v2016_v12 }
 0x1aa   :  { %v1798_v32 = vadd.f32 %v1797_v14, %v1031_v34  ;;  %v1801_v33 = vadd.f32 %v962_v29, %v2267_v17  ;;  %v964_v30 = vpop.f32.mrb[7].mxu0  ;;  %v1114_v41 = vmax.bf16 %v2149_v10, %v1106_v13  ;;  %1756 = vmatpush3.bf16.msra.mxu0 %v2016_v12  ;;  %v1319_v13 = vld [vmem:[%s2374_s4] sm:$0x1] }
 0x1ab   :  { %v1800_v36 = vadd.f32 %v1799_v28, %v1033_v35  ;;  %v1803_v37 = vadd.f32 %v964_v30, %v2269_v18  ;;  %v1115_v40 = vmax.bf16 %v2149_v10, %v1107_v31  ;;  %v1321_v27 = vpack.i.b16 %v1319_v13, %v1319_v13 }
 0x1ac   :  { %v1802_v42 = vadd.f32 %v1801_v33, %v1035_v38 }
 0x1ad   :  { %v1804_v45 = vadd.f32 %v1803_v37, %v1037_v39  ;;  %1282 = vmatprep.mubr.bf16.mxu1 %v1115_v40  ;;  %v1326_v30 = vrot.slane %v1321_v27, %v2292_v53 }
 0x1ae   :  { %v1062_v15 = vpack.c.bf16 %v1802_v42, %v1798_v32  ;;  %1283 = vmatmul.mubr.bf16.vlgmr.msra.gmra.mrb[32].mxu1 %v1114_v41 }
 0x1af   :  { %v1063_v16 = vpack.c.bf16 %v1804_v45, %v1800_v36  ;;  %v968_v47 = vpop.f32.mrb[8].mxu0  ;;  %1781 = vmatpush3.bf16.msra.mxu1 %v2254_v7 }
 0x1b0   :  { %v1805_v34 = vadd.f32 %v968_v47, %v2271_v19  ;;  %v970_v17 = vpop.f32.mrb[9].mxu0  ;;  %v1108_v35 = vadd.bf16 %v2299_v1, %v1062_v15  ;;  %1774 = vmatprep.subr.bf16.mxu1 %v2256_v8 }
 0x1b1   :  { %v1807_v18 = vadd.f32 %v970_v17, %v2273_v20  ;;  %v972_v49 = vpop.f32.mrb[10].mxu0  ;;  %v1109_v38 = vadd.bf16 %v2304_v4, %v1063_v16 }
 0x1b2   :  { %v1806_v39 = vadd.f32 %v1805_v34, %v1041_v43  ;;  %v1809_v50 = vadd.f32 %v972_v49, %v2275_v21  ;;  %v974_v51 = vpop.f32.mrb[11].mxu0  ;;  %v1116_v55 = vmax.bf16 %v2149_v10, %v1108_v35 }
 0x1b3   :  { %v1808_v52 = vadd.f32 %v1807_v18, %v1043_v44  ;;  %v1811_v54 = vadd.f32 %v974_v51, %v2277_v22  ;;  %v1117_v7 = vmax.bf16 %v2149_v10, %v1109_v38  ;;  %1782 = vmatpush3.bf16.msra.mxu1 %v2256_v8 }
 0x1b4   :  { %v1810_v19 = vadd.f32 %v1809_v50, %v1045_v46  ;;  %1775 = vmatprep.subr.bf16.mxu1 %v2262_v9 }
 0x1b5   :  { %v1812_v20 = vadd.f32 %v1811_v54, %v2290_v48  ;;  %1290 = vmatprep.mubr.bf16.mxu1 %v1117_v7 }
 0x1b6   :  { %v1064_v56 = vpack.c.bf16 %v1810_v19, %v1806_v39  ;;  %1291 = vmatmul.mubr.bf16.gmra.mrb[36].mxu1 %v1116_v55 }
 0x1b7   :  { %v1065_v43 = vpack.c.bf16 %v1812_v20, %v1808_v52  ;;  %v978_v21 = vpop.f32.mrb[12].mxu0  ;;  %1783 = vmatpush3.bf16.msra.mxu1 %v2262_v9 }
 0x1b8   :  { %v1813_v22 = vadd.f32 %v978_v21, %v2279_v23  ;;  %v980_v44 = vpop.f32.mrb[13].mxu0  ;;  %v1110_v57 = vadd.bf16 %v2299_v1, %v1064_v56  ;;  %1776 = vmatprep.subr.bf16.mxu1 %v2016_v12 }
 0x1b9   :  { %v1815_v8 = vadd.f32 %v980_v44, %v2281_v24  ;;  %v982_v46 = vpop.f32.mrb[14].mxu0  ;;  %v1111_v58 = vadd.bf16 %v2304_v4, %v1065_v43 }
 0x1ba   :  { %v1814_v59 = vadd.f32 %v1813_v22, %v2294_v60  ;;  %v1817_v48 = vadd.f32 %v982_v46, %v2283_v25  ;;  %v984_v61 = vpop.f32.mrb[15].mxu0  ;;  %v1118_v3 = vmax.bf16 %v2149_v10, %v1110_v57 }
 0x1bb   :  { %v1816_v62 = vadd.f32 %v1815_v8, %v2296_v63  ;;  %v1819_v0 = vadd.f32 %v984_v61, %v2285_v26  ;;  %v1119_v9 = vmax.bf16 %v2149_v10, %v1111_v58  ;;  %1784 = vmatpush3.bf16.msra.mxu1 %v2016_v12  ;;  %v1649_v8 = vld [vmem:[%s2376_s6] ss:$0 sm:$0xff]  ;;  %s2109_s6 = scalar_lea.vmem %s1517_s9, 512 }
 0x1bc   :  { %v1818_v23 = vadd.f32 %v1817_v48, %v2301_v2  ;;  %v2017_v2 = vld [vmem:[#allocation8 + $0x20] sm:$0xff]   ;;  %p2110_p4 = scmp.ne.s32.totalorder %s1517_s9, %s2109_s6  ;;  %p2115_p6 = scmp.lt.s32.totalorder %s2109_s6, %s2109_s6 }
 0x1bd   :  { %v1820_v24 = vadd.f32 %v1819_v0, %v2306_v5  ;;  %1298 = vmatprep.mubr.bf16.mxu1 %v1119_v9  ;;  %1757 = vmatprep.subr.bf16.mxu0 %v2017_v2  ;;  %v2018_v5 = vld [vmem:[#allocation8 + $0x28] sm:$0xff]  }
 0x1be   :  { %v1066_v6 = vpack.c.bf16 %v1818_v23, %v1814_v59  ;;  %1299 = vmatmul.mubr.bf16.gmra.mrb[40].mxu1 %v1118_v3  ;;  %1777 = vmatprep.subr.bf16.mxu1 %v2017_v2  ;;  %p2116_p7 = por %p2115_p6, %p2114_p5 }
 0x1bf   :  { %v1067_v11 = vpack.c.bf16 %v1820_v24, %v1816_v62  ;;  %1758 = vmatpush3.bf16.msra.mxu0 %v2017_v2  ;;  %1785 = vmatpush3.bf16.msra.mxu1 %v2017_v2 }
 0x1c0   :  { %v1112_v60 = vadd.bf16 %v2299_v1, %v1066_v6  ;;  %1759 = vmatprep.subr.bf16.mxu0 %v2018_v5  ;;  %1778 = vmatprep.subr.bf16.mxu1 %v2018_v5  ;;  %v2019_v1 = vld [vmem:[#allocation8 + $0x30] sm:$0xff]   ;;  %p2117_p8 = pnand %p2116_p7, %p2110_p4 }
 0x1c1   :  { %v1113_v25 = vadd.bf16 %v2304_v4, %v1067_v11  ;;  %v2020_v4 = vld [vmem:[#allocation8 + $0x38] sm:$0xff]  }
 0x1c2   :  { %v1120_v26 = vmax.bf16 %v2149_v10, %v1112_v60 }
 0x1c3   :  { %v1121_v63 = vmax.bf16 %v2149_v10, %v1113_v25  ;;  %1760 = vmatpush3.bf16.msra.mxu0 %v2018_v5  ;;  %1786 = vmatpush3.bf16.msra.mxu1 %v2018_v5 }
 0x1c4   :  { %1761 = vmatprep.subr.bf16.mxu0 %v2019_v1  ;;  %1779 = vmatprep.subr.bf16.mxu1 %v2019_v1 }
 0x1c5   :  { %1306 = vmatprep.mubr.bf16.mxu1 %v1121_v63 }
 0x1c6   :  { %1307 = vmatmul.mubr.bf16.gmra.mrb[44].mxu1 %v1120_v26 }
 0x1c7   :  { %1762 = vmatpush3.bf16.msra.mxu0 %v2019_v1  ;;  %1787 = vmatpush3.bf16.msra.mxu1 %v2019_v1 }
 0x1c8   :  { %1763 = vmatprep.subr.bf16.mxu0 %v2020_v4  ;;  %1780 = vmatprep.subr.bf16.mxu1 %v2020_v4 }
 0x1cb   :  { %1764 = vmatpush3.bf16.msra.mxu0 %v2020_v4  ;;  %1788 = vmatpush3.bf16.msra.mxu1 %v2020_v4 }
 0x281   :  { %v1713_v14 = vpop.f32.mrb[32].mxu1 }
 0x282   :  { %v1714_v28 = vpop.f32.mrb[33].mxu1 }
 0x283   :  { %v1715_v29 = vadd.f32 %v1714_v28, %v1713_v14  ;;  %v1716_v31 = vpop.f32.mrb[34].mxu1 }
 0x284   :  { %v1717_v32 = vpop.f32.mrb[35].mxu1 }
 0x285   :  { %v1718_v33 = vadd.f32 %v1717_v32, %v1716_v31 }
 0x287   :  { %v1315_v36 = vpack.c.bf16 %v1718_v33, %v1715_v29 }
 0x289   :  { %v1327_v37 = vadd.bf16 %v1326_v30, %v1315_v36  ;;  %v1719_v40 = vpop.f32.mrb[36].mxu1 }
 0x28a   :  { %v1720_v41 = vpop.f32.mrb[37].mxu1 }
 0x28b   :  { %v1721_v42 = vadd.f32 %v1720_v41, %v1719_v40  ;;  %v1722_v45 = vpop.f32.mrb[38].mxu1  ;;  %v1331_v15 = vmax.bf16 %v2149_v10, %v1327_v37 }
 0x28c   :  { %v1723_v16 = vpop.f32.mrb[39].mxu1 }
 0x28d   :  { %v1724_v47 = vadd.f32 %v1723_v16, %v1722_v45  ;;  %1765 = vmatprep.mubr.bf16.mxu0 %v1331_v15 }
 0x28f   :  { %v1316_v34 = vpack.c.bf16 %v1724_v47, %v1721_v42 }
 0x291   :  { %v1328_v17 = vadd.bf16 %v1326_v30, %v1316_v34  ;;  %v1725_v35 = vpop.f32.mrb[40].mxu1 }
 0x292   :  { %v1726_v18 = vpop.f32.mrb[41].mxu1 }
 0x293   :  { %v1332_v49 = vmax.bf16 %v2149_v10, %v1328_v17  ;;  %v1727_v38 = vadd.f32 %v1726_v18, %v1725_v35  ;;  %v1728_v39 = vpop.f32.mrb[42].mxu1 }
 0x294   :  { %v1729_v53 = vpop.f32.mrb[43].mxu1 }
 0x295   :  { %v1730_v50 = vadd.f32 %v1729_v53, %v1728_v39  ;;  %1766 = vmatmul.mubr.bf16.vlgmr.msra.gmra.mrb[16].mxu0 %v1332_v49 }
 0x297   :  { %v1317_v51 = vpack.c.bf16 %v1730_v50, %v1727_v38 }
 0x299   :  { %v1329_v52 = vadd.bf16 %v1326_v30, %v1317_v51  ;;  %v1731_v54 = vpop.f32.mrb[44].mxu1 }
 0x29a   :  { %v1732_v7 = vpop.f32.mrb[45].mxu1 }
 0x29b   :  { %v1733_v19 = vadd.f32 %v1732_v7, %v1731_v54  ;;  %v1734_v55 = vpop.f32.mrb[46].mxu1  ;;  %v1333_v20 = vmax.bf16 %v2149_v10, %v1329_v52 }
 0x29c   :  { %v1735_v56 = vpop.f32.mrb[47].mxu1 }
 0x29d   :  { %v1736_v43 = vadd.f32 %v1735_v56, %v1734_v55  ;;  %1769 = vmatprep.mubr.bf16.mxu1 %v1333_v20 }
 0x29f   :  { %v1318_v21 = vpack.c.bf16 %v1736_v43, %v1733_v19 }
 0x2a1   :  { %v1330_v22 = vadd.bf16 %v1326_v30, %v1318_v21 }
 0x2a3   :  { %v1334_v44 = vmax.bf16 %v2149_v10, %v1330_v22 }
 0x2a5   :  { %1770 = vmatmul.mubr.bf16.vlgmr.msra.gmra.mrb[48].mxu1 %v1334_v44 }
 0x368   :  { %v1767_v57 = vpop.f32.mrb[16].mxu0 }
 0x369   :  { %v1440_v46 = vpop.f32.mrb[17].mxu0  ;;  %v1449_v59 = vadd.f32 %v1767_v57, %v1649_v8 }
 0x36a   :  { %v1768_v58 = vpop.f32.mrb[18].mxu0  ;;  %v1441_v62 = vadd.f32 %v1649_v8, %v1440_v46 }
 0x36b   :  { %v1452_v48 = vadd.f32 %v1768_v58, %v1649_v8  ;;  %v1443_v61 = vpop.f32.mrb[19].mxu0 }
 0x36c   :  { %v1444_v0 = vadd.f32 %v1649_v8, %v1443_v61 }
 0x36d   :  { %v1682_v9 = vpack.c.bf16 %v1452_v48, %v1449_v59 }
 0x36e   :  { %v1677_v23 = vpack.c.bf16 %v1444_v0, %v1441_v62 }
 0x36f   :  { %1694 = vst [vmem:[#allocation10 + $0x8] sm:$0xff] %v1682_v9  }
 0x370   :  { %1678 = vst [vmem:[#allocation10] sm:$0xff] %v1677_v23  }
 0x378   :  { %v1771_v3 = vpop.f32.mrb[48].mxu1 }
 0x379   :  { %v1456_v24 = vpop.f32.mrb[49].mxu1  ;;  %v1465_v6 = vadd.f32 %v1771_v3, %v1649_v8 }
 0x37a   :  { %v1772_v10 = vpop.f32.mrb[50].mxu1  ;;  %v1457_v25 = vadd.f32 %v1649_v8, %v1456_v24 }
 0x37b   :  { %v1468_v11 = vadd.f32 %v1772_v10, %v1649_v8  ;;  %v1459_v60 = vpop.f32.mrb[51].mxu1 }
 0x37c   :  { %v1460_v63 = vadd.f32 %v1649_v8, %v1459_v60 }
 0x37d   :  { %v1692_v26 = vpack.c.bf16 %v1468_v11, %v1465_v6 }
 0x37e   :  { %v1687_v12 = vpack.c.bf16 %v1460_v63, %v1457_v25 }
 0x37f   :  { %1696 = vst [vmem:[#allocation10 + $0x18] sm:$0xff] %v1692_v26  }
 0x380   :  { %1695 = vst [vmem:[#allocation10 + $0x10] sm:$0xff] %v1687_v12  }
 0x381   :  { %2120 = shalt.err (!%p2117_p8)
}
 0x382   :  { %s2121_s12 = scalar_lea.hbm %s2377_s7, 512 }
 0x383   :  { %p2122_p9 = scmp.ne.s32.totalorder %s2377_s7, %s2121_s12  ;;  %p2125_p10 = scmp.lt.u32.totalorder %s2121_s12, %s2377_s7 }
 0x385   :  { %p2127_p11 = pnand %p2125_p10, %p2122_p9 }
 0x387   :  { %2130 = shalt.err (!%p2127_p11)
}
 0x388   :  { %1522 = dma.vmem_to_hbm [thread:$0]  %s1517_s9, 512, %s2377_s7, [#allocation4], %s2146_s0, %s2146_s0, %s2147_s15  }
 0x389   :  { %2137 = dma.done.wait [#allocation4], 512  }
 0x38a   :  { %2138 = vsyncadd [#allocation4], 4294966784 }
 0x38b   :  { %1526 = vsyncpa [#allocation3], 1 }
 0x38c   :  { %1527 = vsyncpa [#allocation6], 1 }
 0x38d   :  { %1528 = vsyncpa [#allocation9], 1 }
 0x38e   :  { %1529 = vsyncpa [#allocation4], 1 }

</bundles_post_ra>
